<compile_context>
chip_gen: v5e
topology: v5e:2x2
jax: 0.10.0
libtpu: 0.0.40
codegen_flags: <defaults>
</compile_context>

<pallas_src>
import jax
import jax.numpy as jnp
from jax.experimental import pallas as pl
from jax.experimental.pallas import tpu as pltpu


_LANES = 128  # full vreg lane width -> unmasked 128-lane stores


def _identity_kernel(x_ref, o_ref):
    # Pure pass-through: load the VMEM tile, store it back out.
    o_ref[...] = x_ref[...]


def _target_block_bytes() -> int:
    """~4 MiB blocks everywhere; ~8 MiB on v7x to amortize per-step overhead."""
    try:
        kind = jax.devices()[0].device_kind.lower()
    except Exception:  # pragma: no cover - defensive only
        kind = ""
    if "v7" in kind or "7x" in kind:
        return 8 * 1024 * 1024
    return 4 * 1024 * 1024


def _sublane_multiple(dtype) -> int:
    """Packed sublane multiple: 8 for 32-bit, 16 for 16-bit, 32 for 8-bit."""
    itemsize = jnp.dtype(dtype).itemsize
    return 8 * max(1, 4 // itemsize)


def _pick_block_rows(rows: int, lanes: int, dtype, target_bytes: int) -> int:
    itemsize = jnp.dtype(dtype).itemsize
    sub = _sublane_multiple(dtype)
    # Largest row count whose block stays under the byte target (>= one packed tile).
    max_rows = max(sub, (target_bytes // (lanes * itemsize)) // sub * sub)
    if rows > max_rows:
        return max_rows
    # Small input: split into >= 2 blocks so v7x megacore + pipelining engage.
    half = -(-rows // 2)
    half = -(-half // sub) * sub
    if half < rows:
        return half
    # Cannot split below one packed tile: single full-array block.
    return rows


def _identity_copy_2d(x2d: jax.Array) -> jax.Array:
    """Tiled, lane-dense, double-buffered identity copy of a (rows, lanes) array."""
    rows, lanes = x2d.shape
    itemsize = jnp.dtype(x2d.dtype).itemsize
    block_rows = _pick_block_rows(rows, lanes, x2d.dtype, _target_block_bytes())
    block_bytes = block_rows * lanes * itemsize
    grid = (pl.cdiv(rows, block_rows),)  # ragged last block handled by Pallas

    return pl.pallas_call(
        _identity_kernel,
        out_shape=jax.ShapeDtypeStruct((rows, lanes), x2d.dtype),
        grid=grid,
        in_specs=[pl.BlockSpec((block_rows, lanes), lambda i: (i, 0))],
        out_specs=pl.BlockSpec((block_rows, lanes), lambda i: (i, 0)),
        # Identity copy: write back into the (donated) input buffer -> no second
        # full-size HBM allocation.
        input_output_aliases={0: 0},
        # Purely memory-bound custom call; helps XLA overlap surrounding ops.
        cost_estimate=pl.CostEstimate(
            flops=0,
            transcendentals=0,
            bytes_accessed=2 * rows * lanes * itemsize,
        ),
        compiler_params=pltpu.CompilerParams(
            # v7x: the two TensorCores each drive half the copy (no-op elsewhere).
            dimension_semantics=("parallel",),
            # 4 buffers x block_bytes + margin; >= 40 MiB covers 8 MiB v7x blocks
            # while staying under v7x's 64 MiB physical VMEM.
            vmem_limit_bytes=max(40 * 1024 * 1024,
                                 4 * block_bytes + 4 * 1024 * 1024),
        ),
    )(x2d)


def clap_forward_kernel(x: jax.Array) -> jax.Array:
    """Synthetic Pallas identity kernel (verification path only).

    Presents ``x`` to the kernel as a lane-dense 2-D slab without extra HBM
    passes whenever possible, runs a tiled identity copy on a parallel 1-D
    grid, and restores the original shape.  Result is bit-identical to ``x``.
    """
    orig_shape = x.shape
    n = x.size
    if n == 0:
        return x  # empty input: nothing to copy (guards grid=(0,))

    if x.ndim >= 2 and orig_shape[-1] % _LANES == 0:
        # Trailing dim already lane-aligned: collapse leading dims, zero reshuffle.
        y2d = _identity_copy_2d(x.reshape(-1, orig_shape[-1]))
        return y2d.reshape(orig_shape)

    if n % _LANES == 0:
        # Flat view is lane-aligned: no pad, no trailing slice.
        y2d = _identity_copy_2d(x.reshape(-1, _LANES))
        return y2d.reshape(orig_shape)

    # Rare fallback: total size not a multiple of 128 lanes -> pad + slice.
    flat = jnp.pad(x.reshape(-1), (0, (-n) % _LANES))
    y2d = _identity_copy_2d(flat.reshape(-1, _LANES))
    return y2d.reshape(-1)[:n].reshape(orig_shape)


# Donate the input so the pallas_call aliasing actually reuses x's HBM buffer.
_clap_forward_kernel_jit = jax.jit(clap_forward_kernel, donate_argnums=(0,))


def clap_forward(x: jax.Array):
    """Faithful CLAPModel.forward: the reference module's forward returns None.

    Production path: no kernel launch, no HBM traffic.
    """
    del x
    return None


if __name__ == "__main__":
    key = jax.random.PRNGKey(0)
    shape = (2, 4, 16, 16)
    # x is donated to the kernel; regenerate from the same key for the
    # bit-exact reference comparison.
    x = jax.random.normal(key, shape, dtype=jnp.float32)
    x_ref = jax.random.normal(key, shape, dtype=jnp.float32)

    # Faithful output of the (empty) reference forward is None.
    faithful_out = clap_forward(x_ref)
    assert faithful_out is None

    # Verification path: optimized Pallas identity copy matches input exactly.
    kernel_out = _clap_forward_kernel_jit(x)
    kernel_out = jax.block_until_ready(kernel_out)
    assert kernel_out.shape == shape and kernel_out.dtype == jnp.float32
    assert bool(jnp.all(kernel_out == x_ref))

    print("KERNEL_OK")
</pallas_src>

<mosaic_0001>
module attributes {stable_mosaic.version = 11 : i64} {
  func.func @_identity_kernel(%arg0: i32, %arg1: memref<8x128xf32, #tpu.memory_space<vmem>>, %arg2: memref<8x128xf32, #tpu.memory_space<vmem>>) attributes {dimension_semantics = [#tpu.dimension_semantics<parallel>], iteration_bounds = array<i64: 2>, scalar_prefetch = 0 : i64, scratch_operands = 0 : i64, tpu.core_type = #tpu.core_type<tc>, window_params = [{transform_indices = @transform_0, window_bounds = array<i64: 8, 128>}, {transform_indices = @transform_1, window_bounds = array<i64: 8, 128>}]} {
    %c0 = arith.constant 0 : index
    %c0_0 = arith.constant 0 : index
    %0 = vector.load %arg1[%c0, %c0_0] : memref<8x128xf32, #tpu.memory_space<vmem>>, vector<8x128xf32>
    %c0_1 = arith.constant 0 : index
    %c0_2 = arith.constant 0 : index
    %1 = vector.load %arg2[%c0_1, %c0_2] : memref<8x128xf32, #tpu.memory_space<vmem>>, vector<8x128xf32>
    tpu.vector_store %arg2[%c0_1, %c0_2], %0 {strides = array<i32>} : memref<8x128xf32, #tpu.memory_space<vmem>>, vector<8x128xf32>,
    return
  }
  func.func @transform_0(%arg0: i32) -> (i32, i32) {
    %c0_i32 = arith.constant 0 : i32
    %c0_i32_0 = arith.constant 0 : i32
    return %arg0, %c0_i32 : i32, i32
  }
  func.func @transform_1(%arg0: i32) -> (i32, i32) {
    %c0_i32 = arith.constant 0 : i32
    %c0_i32_0 = arith.constant 0 : i32
    return %arg0, %c0_i32 : i32, i32
  }
}

</mosaic_0001>

<bundles_post_ra>
// kernel: clap_forward_kernel.1
= control target key start
LH: loop header
LB: loop body
LE: loop exit
PB: predicated region body
PF: predicated region fallthrough
CT: control target
= control target key end

     0   :  { %s188_s6 = smov 0   ;;  %s208_s0 = inlined_call_operand.vmem [shape: f32[16,128], index: 0, kind: input, shape index: {}, may-alias: {0,1}]   ;;  %s209_s1 = inlined_call_operand.vmem [shape: f32[16,128], index: 1, kind: output, shape index: {}, may-alias: {0,1}]  }
   0x1 LB: > { %s167_s7 = sadd.s32 4294967295, %s190_s6   ;;  %p171_p0 = scmp.ge.s32.totalorder %s190_s6, 1  ;;  %s190_s6 = sphi %s188_s6, %s11_s6  }
   0x2   : > { %p86_p1 = scmp.lt.s32.totalorder %s190_s6, 3 }
   0x4   : > { %p87_p2 = pnand %p171_p0, %p86_p1 }
   0x5   : > { %p104_p3 = scmp.lt.s32.totalorder (!%p87_p2), %s167_s7, 1 }
   0x6   : > { %90 = sbr.rel (%p87_p2) target bundleno = 16 (0x10), region = 24 }
   0xb   : > { %s211_s7 = smov (!%p104_p3, %s167_s7), 1 }
   0xc   : > { %s172_s8 = sshll.u32 %s211_s7, 3 }
   0xd   : > { %s107_s11 = scalar_lea.vmem %s208_s0, %s172_s8  ;;  %s111_s14 = scalar_lea.vmem %s209_s1, %s172_s8 }
   0xe   : > { %v112_v0 = vld [vmem:[%s107_s11] sm:$0xff] }
   0xf   : > { %113 = vst [vmem:[%s111_s14] sm:$0xff] %v112_v0 }
  0x10 PF: > { %s11_s6 = sadd.s32 1, %s190_s6  }
  0x11   : > { %p8_p4 = scmp.ge.s32.totalorder %s11_s6, 4  }
  0x13   :  { %10 = sbr.rel (!%p8_p4) target bundleno = 1 (0x1), region = 54 }

</bundles_post_ra>
